<compile_context>
chip_gen: v7x
topology: tpu7x:2x2x1
jax: 0.10.0
libtpu: 0.0.40
codegen_flags: <defaults>
</compile_context>

<pallas_src>
import functools

import jax
import jax.numpy as jnp
from jax import lax
from jax.experimental import pallas as pl
from jax.experimental.pallas import tpu as pltpu

_LATENT = 200
_HIDDEN = 256
_OUT = 784
_EPS = 1e-5


def _generation_kernel(cache_h, n_ref, x_ref, w1_ref, gamma_ref, beta_ref,
                       w2_ref, b2_ref, o_ref, *scratch):
    if cache_h:
        h_ref, sum_ref, ssq_ref, scale_ref, shift_ref = scratch
    else:
        sum_ref, ssq_ref, scale_ref, shift_ref = scratch

    phase = pl.program_id(0)
    tile = pl.program_id(1)
    mm_dtype = w1_ref.dtype

    def matmul1():
        # Linear(200->256) on the MXU (bf16 operands, f32 accumulate).  Bias
        # omitted: under training-mode BatchNorm,
        # (xW1+b1) - mean(xW1+b1) == xW1 - mean(xW1) exactly.
        return jnp.dot(x_ref[...].astype(mm_dtype), w1_ref[...],
                       preferred_element_type=jnp.float32)

    if not cache_h:
        h_live = matmul1()  # recompute fallback: needed by both phases

    @pl.when(phase == 0)
    def _stats():
        @pl.when(tile == 0)
        def _init():
            sum_ref[...] = jnp.zeros_like(sum_ref)
            ssq_ref[...] = jnp.zeros_like(ssq_ref)

        h = matmul1() if cache_h else h_live
        if cache_h:
            h_ref[tile] = h
        # One-pass stats are safe here because b1 is dropped and the GAN
        # latent is ~zero-mean; switch to shifted/two-pass variance if input
        # statistics ever change.
        sum_ref[...] += jnp.sum(h, axis=0, keepdims=True)
        ssq_ref[...] += jnp.sum(h * h, axis=0, keepdims=True)

    @pl.when(phase == 1)
    def _apply():
        @pl.when(tile == 0)
        def _finalize():
            inv_n = 1.0 / n_ref[0].astype(jnp.float32)
            mean = sum_ref[...] * inv_n
            var = ssq_ref[...] * inv_n - mean * mean
            s = gamma_ref[...] * lax.rsqrt(var + _EPS)
            scale_ref[...] = s
            shift_ref[...] = beta_ref[...] - mean * s

        h = h_ref[tile] if cache_h else h_live
        # Fused BN + ReLU: two broadcast VPU ops on the [tile_b, 256] tile.
        hn = jnp.maximum(h * scale_ref[...] + shift_ref[...], 0.0)
        # Linear(256->784) on the MXU, then bias + ReLU.
        out = jnp.dot(hn.astype(mm_dtype), w2_ref[...],
                      preferred_element_type=jnp.float32)
        o_ref[...] = jnp.maximum(out + b2_ref[...], 0.0).astype(o_ref.dtype)


def _pick_tile_b(batch):
    # Fatter tiles amortize the ~0.35us/grid-step overhead and keep the MXU
    # fed.  Capped at 512 so double-buffered x/out tiles stay inside the v5e
    # 16 MiB scoped-VMEM default and leave h-cache headroom on v7x (64 MiB).
    for tb in (512, 256, 128, 64, 32, 16, 8):
        if batch % tb == 0:
            return tb
    return batch  # single block == full batch dim (allowed even if <8)


def _vmem_limit_bytes(batch, tile_b, n_tiles, mm_itemsize, cache_h):
    dbl = 2  # Pallas double-buffers every auto-pipelined block
    b = 0
    b += dbl * tile_b * _LATENT * 4          # x tiles (f32)
    b += dbl * _LATENT * _HIDDEN * mm_itemsize   # w1 (resident)
    b += dbl * 2 * _HIDDEN * 4               # gamma, beta
    b += dbl * _HIDDEN * _OUT * mm_itemsize      # w2 (resident)
    b += dbl * _OUT * 4                      # b2
    b += dbl * tile_b * _OUT * 4             # out tiles
    if cache_h:
        b += n_tiles * tile_b * _HIDDEN * 4  # h cache
    b += 4 * _HIDDEN * 4                     # stats / scale / shift scratch
    # Generous headroom for (8,128) padding + Mosaic internal scratch.
    return int(b * 1.5) + (8 << 20)


def generation_forward(x, w1, b1, gamma, beta, w2, b2, *, tile_b=None,
                       matmul_dtype=jnp.bfloat16, cache_h=None):
    del b1  # cancels exactly under training-mode BatchNorm1d
    batch = x.shape[0]
    if tile_b is None:
        tile_b = _pick_tile_b(batch)
    assert batch % tile_b == 0, (batch, tile_b)
    n_tiles = batch // tile_b

    if cache_h is None:
        # Cache h (batch KiB of f32) unless it would crowd VMEM on v7x
        # (64 MiB physical / 32 MiB scoped default); then recompute matmul1.
        cache_h = batch * _HIDDEN * 4 <= (24 << 20)

    x = x.astype(jnp.float32)
    w1_c = w1.astype(matmul_dtype)
    w2_c = w2.astype(matmul_dtype)
    gamma_c = gamma.astype(jnp.float32).reshape(1, _HIDDEN)
    beta_c = beta.astype(jnp.float32).reshape(1, _HIDDEN)
    b2_c = b2.astype(jnp.float32).reshape(1, _OUT)

    kernel = functools.partial(_generation_kernel, cache_h)

    if cache_h:
        x_map = lambda p, j, n: ((1 - p) * j, 0)  # park x during apply phase
    else:
        x_map = lambda p, j, n: (j, 0)            # recompute path re-reads x

    scratch = []
    if cache_h:
        scratch.append(pltpu.VMEM((n_tiles, tile_b, _HIDDEN), jnp.float32))
    scratch += [
        pltpu.VMEM((1, _HIDDEN), jnp.float32),  # running sum
        pltpu.VMEM((1, _HIDDEN), jnp.float32),  # running sum of squares
        pltpu.VMEM((1, _HIDDEN), jnp.float32),  # BN fused scale
        pltpu.VMEM((1, _HIDDEN), jnp.float32),  # BN fused shift
    ]

    vmem_limit = _vmem_limit_bytes(batch, tile_b, n_tiles,
                                   jnp.dtype(matmul_dtype).itemsize, cache_h)

    out = pl.pallas_call(
        kernel,
        out_shape=jax.ShapeDtypeStruct((batch, _OUT), jnp.float32),
        grid_spec=pltpu.PrefetchScalarGridSpec(
            num_scalar_prefetch=1,
            grid=(2, n_tiles),                                      # (phase, batch tile)
            in_specs=[
                pl.BlockSpec((tile_b, _LATENT), x_map),                    # x tile
                pl.BlockSpec((_LATENT, _HIDDEN), lambda p, j, n: (0, 0)),  # w1 (resident)
                pl.BlockSpec((1, _HIDDEN), lambda p, j, n: (0, 0)),        # gamma
                pl.BlockSpec((1, _HIDDEN), lambda p, j, n: (0, 0)),        # beta
                pl.BlockSpec((_HIDDEN, _OUT), lambda p, j, n: (0, 0)),     # w2 (resident)
                pl.BlockSpec((1, _OUT), lambda p, j, n: (0, 0)),           # b2
            ],
            # Park the output block at tile 0 during the stats phase (p == 0)
            # so nothing uninitialized is written back; track tiles in phase 1.
            # Relies on writeback-on-block-index-change; keep the multi-tile
            # test below if the pipelining mode is ever changed.
            out_specs=pl.BlockSpec((tile_b, _OUT), lambda p, j, n: (p * j, 0)),
            scratch_shapes=scratch,
        ),
        compiler_params=pltpu.CompilerParams(
            dimension_semantics=("arbitrary", "arbitrary"),
            vmem_limit_bytes=vmem_limit),
    )(jnp.array([batch], jnp.int32), x, w1_c, gamma_c, beta_c, w2_c, b2_c)

    return out


def init_params(key):
    """Deterministic synthetic parameters matching the PyTorch module shapes."""
    k1, k2, k3, k4 = jax.random.split(key, 4)
    # Linear(200, 256): PyTorch-style uniform(-1/sqrt(fan_in), 1/sqrt(fan_in))
    lim1 = 1.0 / jnp.sqrt(200.0)
    w1 = jax.random.uniform(k1, (200, 256), jnp.float32, -lim1, lim1)
    b1 = jax.random.uniform(k2, (1, 256), jnp.float32, -lim1, lim1)
    # BatchNorm1d(256): weight=1, bias=0 (default init)
    gamma = jnp.ones((1, 256), jnp.float32)
    beta = jnp.zeros((1, 256), jnp.float32)
    # Linear(256, 784)
    lim2 = 1.0 / jnp.sqrt(256.0)
    w2 = jax.random.uniform(k3, (256, 784), jnp.float32, -lim2, lim2)
    b2 = jax.random.uniform(k4, (1, 784), jnp.float32, -lim2, lim2)
    return w1, b1, gamma, beta, w2, b2


def reference_forward(x, w1, b1, gamma, beta, w2, b2):
    h = x @ w1 + b1
    mean = jnp.mean(h, axis=0, keepdims=True)
    var = jnp.mean((h - mean) ** 2, axis=0, keepdims=True)
    h = (h - mean) * lax.rsqrt(var + _EPS) * gamma + beta
    h = jnp.maximum(h, 0.0)
    return jnp.maximum(h @ w2 + b2, 0.0)


if __name__ == "__main__":
    key = jax.random.PRNGKey(0)
    kx, kx2, kp = jax.random.split(key, 3)

    params = init_params(kp)

    # Small single-tile batch, default fast path (bf16 matmuls, f32 BN/acc).
    x = jax.random.normal(kx, (8, _LATENT), jnp.float32)
    out = jax.block_until_ready(generation_forward(x, *params))
    ref = reference_forward(x, *params)
    assert out.shape == (8, _OUT), out.shape
    assert jnp.allclose(out, ref, atol=5e-2, rtol=5e-2), "mismatch (B=8, bf16)"

    # Multi-tile batch: cross-tile BatchNorm stats, h-cache indexing, output
    # parking across the stats phase.
    x2 = jax.random.normal(kx2, (32, _LATENT), jnp.float32)
    out2 = jax.block_until_ready(generation_forward(x2, *params, tile_b=8))
    ref2 = reference_forward(x2, *params)
    assert out2.shape == (32, _OUT), out2.shape
    assert jnp.allclose(out2, ref2, atol=5e-2, rtol=5e-2), "mismatch (B=32, bf16)"

    # Bit-accurate f32 matmul path (tight tolerance), cached-h variant.
    out3 = jax.block_until_ready(
        generation_forward(x2, *params, tile_b=8, matmul_dtype=jnp.float32))
    assert jnp.allclose(out3, ref2, atol=2e-4, rtol=2e-4), "mismatch (B=32, f32)"

    # Recompute-fallback path (taken automatically for very large batches).
    out4 = jax.block_until_ready(
        generation_forward(x2, *params, tile_b=8, matmul_dtype=jnp.float32,
                           cache_h=False))
    assert jnp.allclose(out4, ref2, atol=2e-4, rtol=2e-4), "mismatch (fallback)"

    print("KERNEL_OK")
</pallas_src>

<mosaic_0001>
module attributes {stable_mosaic.version = 11 : i64} {
  func.func @_generation_kernel(%arg0: i32, %arg1: i32, %arg2: memref<1xi32, #tpu.memory_space<smem>>, %arg3: memref<8x200xf32, #tpu.memory_space<vmem>>, %arg4: memref<200x256xbf16, #tpu.memory_space<vmem>>, %arg5: memref<1x256xf32, #tpu.memory_space<vmem>>, %arg6: memref<1x256xf32, #tpu.memory_space<vmem>>, %arg7: memref<256x784xbf16, #tpu.memory_space<vmem>>, %arg8: memref<1x784xf32, #tpu.memory_space<vmem>>, %arg9: memref<8x784xf32, #tpu.memory_space<vmem>>, %arg10: memref<1x8x256xf32, #tpu.memory_space<vmem>>, %arg11: memref<1x256xf32, #tpu.memory_space<vmem>>, %arg12: memref<1x256xf32, #tpu.memory_space<vmem>>, %arg13: memref<1x256xf32, #tpu.memory_space<vmem>>, %arg14: memref<1x256xf32, #tpu.memory_space<vmem>>) attributes {dimension_semantics = [#tpu.dimension_semantics<arbitrary>, #tpu.dimension_semantics<arbitrary>], iteration_bounds = array<i64: 2, 1>, scalar_prefetch = 1 : i64, scratch_operands = 5 : i64, tpu.core_type = #tpu.core_type<tc>, window_params = [{transform_indices = @transform_0, window_bounds = array<i64: 8, 200>}, {pipeline_mode = #tpu.pipeline_mode<synchronous>, transform_indices = @transform_1, window_bounds = array<i64: 200, 256>}, {pipeline_mode = #tpu.pipeline_mode<synchronous>, transform_indices = @transform_2, window_bounds = array<i64: 1, 256>}, {pipeline_mode = #tpu.pipeline_mode<synchronous>, transform_indices = @transform_3, window_bounds = array<i64: 1, 256>}, {pipeline_mode = #tpu.pipeline_mode<synchronous>, transform_indices = @transform_4, window_bounds = array<i64: 256, 784>}, {pipeline_mode = #tpu.pipeline_mode<synchronous>, transform_indices = @transform_5, window_bounds = array<i64: 1, 784>}, {transform_indices = @transform_6, window_bounds = array<i64: 8, 784>}]} {
    %c0_i32 = arith.constant 0 : i32
    %0 = arith.cmpi eq, %arg0, %c0_i32 : i32
    %1 = arith.extui %0 : i1 to i32
    %c0_i32_0 = arith.constant 0 : i32
    %2 = arith.cmpi ne, %1, %c0_i32_0 : i32
    scf.if %2 {
      %c0_i32_2 = arith.constant 0 : i32
      %6 = arith.cmpi eq, %arg1, %c0_i32_2 : i32
      %7 = arith.extui %6 : i1 to i32
      %c0_i32_3 = arith.constant 0 : i32
      %8 = arith.cmpi ne, %7, %c0_i32_3 : i32
      scf.if %8 {
        %cst_19 = arith.constant 0.000000e+00 : f32
        %28 = vector.broadcast %cst_19 : f32 to vector<1x256xf32>
        %c0_20 = arith.constant 0 : index
        %c0_21 = arith.constant 0 : index
        %29 = vector.load %arg11[%c0_20, %c0_21] : memref<1x256xf32, #tpu.memory_space<vmem>>, vector<1x256xf32>
        tpu.vector_store %arg11[%c0_20, %c0_21], %28 {strides = array<i32>} : memref<1x256xf32, #tpu.memory_space<vmem>>, vector<1x256xf32>,
        %cst_22 = arith.constant 0.000000e+00 : f32
        %30 = vector.broadcast %cst_22 : f32 to vector<1x256xf32>
        %c0_23 = arith.constant 0 : index
        %c0_24 = arith.constant 0 : index
        %31 = vector.load %arg12[%c0_23, %c0_24] : memref<1x256xf32, #tpu.memory_space<vmem>>, vector<1x256xf32>
        tpu.vector_store %arg12[%c0_23, %c0_24], %30 {strides = array<i32>} : memref<1x256xf32, #tpu.memory_space<vmem>>, vector<1x256xf32>,
      } else {
      }
      %c0 = arith.constant 0 : index
      %c0_4 = arith.constant 0 : index
      %9 = vector.load %arg3[%c0, %c0_4] : memref<8x200xf32, #tpu.memory_space<vmem>>, vector<8x200xf32>
      %10 = arith.truncf %9 : vector<8x200xf32> to vector<8x200xbf16>
      %c0_5 = arith.constant 0 : index
      %c0_6 = arith.constant 0 : index
      %11 = vector.load %arg4[%c0_5, %c0_6] : memref<200x256xbf16, #tpu.memory_space<vmem>>, vector<200x256xbf16>
      %cst = arith.constant dense<0.000000e+00> : vector<8x256xf32>
      %12 = tpu.matmul %10, %11, %cst {dimension_numbers = #tpu.dot_dimension_numbers<[1], [0], [0], [1], [0, 0, 1, 1], [], []>} : vector<8x200xbf16>, vector<200x256xbf16>, vector<8x256xf32> -> vector<8x256xf32>
      %13 = arith.index_cast %arg1 : i32 to index
      %c0_7 = arith.constant 0 : index
      %c0_8 = arith.constant 0 : index
      %14 = vector.load %arg10[%13, %c0_7, %c0_8] : memref<1x8x256xf32, #tpu.memory_space<vmem>>, vector<1x8x256xf32>
      %15 = vector.shape_cast %14 : vector<1x8x256xf32> to vector<8x256xf32>
      %16 = vector.shape_cast %12 : vector<8x256xf32> to vector<1x8x256xf32>
      tpu.vector_store %arg10[%13, %c0_7, %c0_8], %16 {strides = array<i32>} : memref<1x8x256xf32, #tpu.memory_space<vmem>>, vector<1x8x256xf32>,
      %c0_9 = arith.constant 0 : index
      %c0_10 = arith.constant 0 : index
      %17 = vector.load %arg11[%c0_9, %c0_10] : memref<1x256xf32, #tpu.memory_space<vmem>>, vector<1x256xf32>
      %cst_11 = arith.constant dense<0.000000e+00> : vector<256xf32>
      %18 = vector.multi_reduction <add>, %12, %cst_11 [0] : vector<8x256xf32> to vector<256xf32>
      %19 = vector.shape_cast %18 : vector<256xf32> to vector<1x256xf32>
      %20 = arith.addf %17, %19 : vector<1x256xf32>
      %c0_12 = arith.constant 0 : index
      %c0_13 = arith.constant 0 : index
      %21 = vector.load %arg11[%c0_12, %c0_13] : memref<1x256xf32, #tpu.memory_space<vmem>>, vector<1x256xf32>
      tpu.vector_store %arg11[%c0_12, %c0_13], %20 {strides = array<i32>} : memref<1x256xf32, #tpu.memory_space<vmem>>, vector<1x256xf32>,
      %c0_14 = arith.constant 0 : index
      %c0_15 = arith.constant 0 : index
      %22 = vector.load %arg12[%c0_14, %c0_15] : memref<1x256xf32, #tpu.memory_space<vmem>>, vector<1x256xf32>
      %23 = arith.mulf %12, %12 : vector<8x256xf32>
      %cst_16 = arith.constant dense<0.000000e+00> : vector<256xf32>
      %24 = vector.multi_reduction <add>, %23, %cst_16 [0] : vector<8x256xf32> to vector<256xf32>
      %25 = vector.shape_cast %24 : vector<256xf32> to vector<1x256xf32>
      %26 = arith.addf %22, %25 : vector<1x256xf32>
      %c0_17 = arith.constant 0 : index
      %c0_18 = arith.constant 0 : index
      %27 = vector.load %arg12[%c0_17, %c0_18] : memref<1x256xf32, #tpu.memory_space<vmem>>, vector<1x256xf32>
      tpu.vector_store %arg12[%c0_17, %c0_18], %26 {strides = array<i32>} : memref<1x256xf32, #tpu.memory_space<vmem>>, vector<1x256xf32>,
    } else {
    }
    %c1_i32 = arith.constant 1 : i32
    %3 = arith.cmpi eq, %arg0, %c1_i32 : i32
    %4 = arith.extui %3 : i1 to i32
    %c0_i32_1 = arith.constant 0 : i32
    %5 = arith.cmpi ne, %4, %c0_i32_1 : i32
    scf.if %5 {
      %c0_i32_2 = arith.constant 0 : i32
      %6 = arith.cmpi eq, %arg1, %c0_i32_2 : i32
      %7 = arith.extui %6 : i1 to i32
      %c0_i32_3 = arith.constant 0 : i32
      %8 = arith.cmpi ne, %7, %c0_i32_3 : i32
      scf.if %8 {
        %c0_17 = arith.constant 0 : index
        %29 = memref.load %arg2[%c0_17] : memref<1xi32, #tpu.memory_space<smem>>
        %30 = arith.sitofp %29 : i32 to f32
        %cst_18 = arith.constant 1.000000e+00 : f32
        %31 = arith.divf %cst_18, %30 : f32
        %c0_19 = arith.constant 0 : index
        %c0_20 = arith.constant 0 : index
        %32 = vector.load %arg11[%c0_19, %c0_20] : memref<1x256xf32, #tpu.memory_space<vmem>>, vector<1x256xf32>
        %33 = vector.broadcast %31 : f32 to vector<1x256xf32>
        %34 = arith.mulf %32, %33 : vector<1x256xf32>
        %c0_21 = arith.constant 0 : index
        %c0_22 = arith.constant 0 : index
        %35 = vector.load %arg12[%c0_21, %c0_22] : memref<1x256xf32, #tpu.memory_space<vmem>>, vector<1x256xf32>
        %36 = vector.broadcast %31 : f32 to vector<1x256xf32>
        %37 = arith.mulf %35, %36 : vector<1x256xf32>
        %38 = arith.mulf %34, %34 : vector<1x256xf32>
        %39 = arith.subf %37, %38 : vector<1x256xf32>
        %c0_23 = arith.constant 0 : index
        %c0_24 = arith.constant 0 : index
        %40 = vector.load %arg5[%c0_23, %c0_24] : memref<1x256xf32, #tpu.memory_space<vmem>>, vector<1x256xf32>
        %cst_25 = arith.constant 9.99999974E-6 : f32
        %41 = vector.broadcast %cst_25 : f32 to vector<1x256xf32>
        %42 = arith.addf %39, %41 : vector<1x256xf32>
        %43 = math.rsqrt %42 : vector<1x256xf32>
        %44 = arith.mulf %40, %43 : vector<1x256xf32>
        %c0_26 = arith.constant 0 : index
        %c0_27 = arith.constant 0 : index
        %45 = vector.load %arg13[%c0_26, %c0_27] : memref<1x256xf32, #tpu.memory_space<vmem>>, vector<1x256xf32>
        tpu.vector_store %arg13[%c0_26, %c0_27], %44 {strides = array<i32>} : memref<1x256xf32, #tpu.memory_space<vmem>>, vector<1x256xf32>,
        %c0_28 = arith.constant 0 : index
        %c0_29 = arith.constant 0 : index
        %46 = vector.load %arg6[%c0_28, %c0_29] : memref<1x256xf32, #tpu.memory_space<vmem>>, vector<1x256xf32>
        %47 = arith.mulf %34, %44 : vector<1x256xf32>
        %48 = arith.subf %46, %47 : vector<1x256xf32>
        %c0_30 = arith.constant 0 : index
        %c0_31 = arith.constant 0 : index
        %49 = vector.load %arg14[%c0_30, %c0_31] : memref<1x256xf32, #tpu.memory_space<vmem>>, vector<1x256xf32>
        tpu.vector_store %arg14[%c0_30, %c0_31], %48 {strides = array<i32>} : memref<1x256xf32, #tpu.memory_space<vmem>>, vector<1x256xf32>,
      } else {
      }
      %9 = arith.index_cast %arg1 : i32 to index
      %c0 = arith.constant 0 : index
      %c0_4 = arith.constant 0 : index
      %10 = vector.load %arg10[%9, %c0, %c0_4] : memref<1x8x256xf32, #tpu.memory_space<vmem>>, vector<1x8x256xf32>
      %11 = vector.shape_cast %10 : vector<1x8x256xf32> to vector<8x256xf32>
      %c0_5 = arith.constant 0 : index
      %c0_6 = arith.constant 0 : index
      %12 = vector.load %arg13[%c0_5, %c0_6] : memref<1x256xf32, #tpu.memory_space<vmem>>, vector<1x256xf32>
      %13 = vector.broadcast %12 : vector<1x256xf32> to vector<8x256xf32>
      %14 = arith.mulf %11, %13 : vector<8x256xf32>
      %c0_7 = arith.constant 0 : index
      %c0_8 = arith.constant 0 : index
      %15 = vector.load %arg14[%c0_7, %c0_8] : memref<1x256xf32, #tpu.memory_space<vmem>>, vector<1x256xf32>
      %16 = vector.broadcast %15 : vector<1x256xf32> to vector<8x256xf32>
      %17 = arith.addf %14, %16 : vector<8x256xf32>
      %cst = arith.constant 0.000000e+00 : f32
      %18 = vector.broadcast %cst : f32 to vector<8x256xf32>
      %19 = arith.maximumf %17, %18 : vector<8x256xf32>
      %20 = arith.truncf %19 : vector<8x256xf32> to vector<8x256xbf16>
      %c0_9 = arith.constant 0 : index
      %c0_10 = arith.constant 0 : index
      %21 = vector.load %arg7[%c0_9, %c0_10] : memref<256x784xbf16, #tpu.memory_space<vmem>>, vector<256x784xbf16>
      %cst_11 = arith.constant dense<0.000000e+00> : vector<8x784xf32>
      %22 = tpu.matmul %20, %21, %cst_11 {dimension_numbers = #tpu.dot_dimension_numbers<[1], [0], [0], [1], [0, 0, 1, 1], [], []>} : vector<8x256xbf16>, vector<256x784xbf16>, vector<8x784xf32> -> vector<8x784xf32>
      %c0_12 = arith.constant 0 : index
      %c0_13 = arith.constant 0 : index
      %23 = vector.load %arg8[%c0_12, %c0_13] : memref<1x784xf32, #tpu.memory_space<vmem>>, vector<1x784xf32>
      %24 = vector.broadcast %23 : vector<1x784xf32> to vector<8x784xf32>
      %25 = arith.addf %22, %24 : vector<8x784xf32>
      %cst_14 = arith.constant 0.000000e+00 : f32
      %26 = vector.broadcast %cst_14 : f32 to vector<8x784xf32>
      %27 = arith.maximumf %25, %26 : vector<8x784xf32>
      %c0_15 = arith.constant 0 : index
      %c0_16 = arith.constant 0 : index
      %28 = vector.load %arg9[%c0_15, %c0_16] : memref<8x784xf32, #tpu.memory_space<vmem>>, vector<8x784xf32>
      tpu.vector_store %arg9[%c0_15, %c0_16], %27 {strides = array<i32>} : memref<8x784xf32, #tpu.memory_space<vmem>>, vector<8x784xf32>,
    } else {
    }
    return
  }
  func.func @transform_0(%arg0: i32, %arg1: i32, %arg2: memref<1xi32, #tpu.memory_space<smem>>) -> (i32, i32) {
    %c1_i32 = arith.constant 1 : i32
    %0 = arith.subi %c1_i32, %arg0 : i32
    %1 = arith.muli %0, %arg1 : i32
    %c0_i32 = arith.constant 0 : i32
    %c0_i32_0 = arith.constant 0 : i32
    return %1, %c0_i32 : i32, i32
  }
  func.func @transform_1(%arg0: i32, %arg1: i32, %arg2: memref<1xi32, #tpu.memory_space<smem>>) -> (i32, i32) {
    %c0_i32 = arith.constant 0 : i32
    %c0_i32_0 = arith.constant 0 : i32
    %c0_i32_1 = arith.constant 0 : i32
    return %c0_i32, %c0_i32_0 : i32, i32
  }
  func.func @transform_2(%arg0: i32, %arg1: i32, %arg2: memref<1xi32, #tpu.memory_space<smem>>) -> (i32, i32) {
    %c0_i32 = arith.constant 0 : i32
    %c0_i32_0 = arith.constant 0 : i32
    %c0_i32_1 = arith.constant 0 : i32
    return %c0_i32, %c0_i32_0 : i32, i32
  }
  func.func @transform_3(%arg0: i32, %arg1: i32, %arg2: memref<1xi32, #tpu.memory_space<smem>>) -> (i32, i32) {
    %c0_i32 = arith.constant 0 : i32
    %c0_i32_0 = arith.constant 0 : i32
    %c0_i32_1 = arith.constant 0 : i32
    return %c0_i32, %c0_i32_0 : i32, i32
  }
  func.func @transform_4(%arg0: i32, %arg1: i32, %arg2: memref<1xi32, #tpu.memory_space<smem>>) -> (i32, i32) {
    %c0_i32 = arith.constant 0 : i32
    %c0_i32_0 = arith.constant 0 : i32
    %c0_i32_1 = arith.constant 0 : i32
    return %c0_i32, %c0_i32_0 : i32, i32
  }
  func.func @transform_5(%arg0: i32, %arg1: i32, %arg2: memref<1xi32, #tpu.memory_space<smem>>) -> (i32, i32) {
    %c0_i32 = arith.constant 0 : i32
    %c0_i32_0 = arith.constant 0 : i32
    %c0_i32_1 = arith.constant 0 : i32
    return %c0_i32, %c0_i32_0 : i32, i32
  }
  func.func @transform_6(%arg0: i32, %arg1: i32, %arg2: memref<1xi32, #tpu.memory_space<smem>>) -> (i32, i32) {
    %0 = arith.muli %arg0, %arg1 : i32
    %c0_i32 = arith.constant 0 : i32
    %c0_i32_0 = arith.constant 0 : i32
    return %0, %c0_i32 : i32, i32
  }
}

</mosaic_0001>

<bundles_post_ra>
// kernel: tpu_custom_call.1
= control target key start
LH: loop header
LB: loop body
LE: loop exit
PB: predicated region body
PF: predicated region fallthrough
CT: control target
= control target key end

     0   :  { %s2698_s0 = inlined_call_operand.<no memory space> [shape: s32[1], index: 0, kind: input, shape index: {}]   ;;  %s2699_s1 = inlined_call_operand.vmem [shape: f32[8,200], index: 1, kind: input, shape index: {}]   ;;  %s2700_s2 = inlined_call_operand.vmem [shape: bf16[200,256], index: 2, kind: input, shape index: {}]   ;;  %s2701_s3 = inlined_call_operand.vmem [shape: f32[1,256], index: 3, kind: input, shape index: {}]   ;;  %s2702_s4 = inlined_call_operand.vmem [shape: f32[1,256], index: 4, kind: input, shape index: {}]   ;;  %s2703_s5 = inlined_call_operand.vmem [shape: bf16[256,784], index: 5, kind: input, shape index: {}]   ;;  %s2704_s6 = inlined_call_operand.vmem [shape: f32[1,784], index: 6, kind: input, shape index: {}]   ;;  %s2705_s7 = inlined_call_operand.hbm [shape: f32[8,784], index: 7, kind: output, shape index: {}]  }
   0x1   :  { %12 = sst [smem:[#allocation8]] %s2698_s0 }
   0x2   :  { %13 = vsyncpa [#allocation10], 0 }
   0x3   :  { %15 = vsyncpa [#allocation10 + $0x1], 0  ;;  %s2169_s26 = smov 0   ;;  %s2171_s27 = smov 0  }
   0x4   :  { %s2173_s28 = smov 0  }
   0x5 LB: > { %s1655_s0 = sadd.s32 4294967295, %s2121_s28   ;;  %s1656_s29 = sadd.s32 4294967294, %s2121_s28   ;;  %s2121_s28 = sphi %s2173_s28, %s21_s28   ;;  %s2117_s27 = sphi %s2171_s27, %s2710_s27   ;;  %s2113_s26 = sphi %s2169_s26, %s2709_s26  }
   0x6   : > { %s33_s30 = sadd.s32 1, %s2117_s27  ;;  %p1660_p0 = scmp.ge.s32.totalorder %s2121_s28, 1 }
   0x7   : > { %p35_p1 = scmp.ge.s32.totalorder %s33_s30, 2  ;;  %p239_p2 = scmp.lt.s32.totalorder %s2121_s28, 3 }
   0x9   : > { %s2712_s30 = smov (%p35_p1, %s33_s30), 0  ;;  %p240_p3 = pnand %p1660_p0, %p239_p2 }
   0xa   : > { %p1661_p4 = scmp.ne.s32.totalorder (!%p240_p3), %s2113_s26, 0 }
   0xb   : > { %243 = sbr.rel (%p240_p3) target bundleno = 726 (0x2d6), region = 44 }
  0x12   : > { %285 = sbr.rel (%p1661_p4) target bundleno = 307 (0x133), region = 48  ;;  %v1869_v0 = vld [vmem:[%s2700_s2 + $0x4] ss:$8 sps:$4 sm:$0xff] (!%p1661_p4)   ;;  %v1871_v1 = vld [vmem:[%s2700_s2] ss:$8 sps:$4 sm:$0xff] (!%p1661_p4)   ;;  %vm450_vm0 = vcmask (!%p1661_p4), 588800   ;;  %v290_v32 = vlaneseq (!%p1661_p4) }
  0x13   : > { %461 = vmatprep.subr.bf16.mxu0 (!%p1661_p4), %v1869_v0  ;;  %v1872_v2 = vld [vmem:[%s2700_s2 + $0x14] ss:$8 sps:$4 sm:$0xff] (!%p1661_p4)   ;;  %v1874_v3 = vld [vmem:[%s2700_s2 + $0x10] ss:$8 sps:$4 sm:$0xff] (!%p1661_p4)   ;;  %v1875_v4 = vld [vmem:[%s2700_s2 + $0x24] ss:$8 sps:$4 sm:$0xff] (!%p1661_p4)  }
  0x14   : > { %462 = vmatpush1.bf16.msra.mxu0 (!%p1661_p4), %v1871_v1  ;;  %v1877_v5 = vld [vmem:[%s2700_s2 + $0x20] ss:$8 sps:$4 sm:$0xff] (!%p1661_p4)   ;;  %v1878_v6 = vld [vmem:[%s2700_s2 + $0x34] ss:$8 sps:$4 sm:$0xff] (!%p1661_p4)   ;;  %v1880_v7 = vld [vmem:[%s2700_s2 + $0x30] ss:$8 sps:$4 sm:$0xff] (!%p1661_p4)  }
  0x15   : > { %463 = vmatprep.subr.bf16.mxu0 (!%p1661_p4), %v1872_v2  ;;  %v1881_v8 = vld [vmem:[%s2700_s2 + $0x44] ss:$8 sps:$4 sm:$0xff] (!%p1661_p4)   ;;  %v1883_v9 = vld [vmem:[%s2700_s2 + $0x40] ss:$8 sps:$4 sm:$0xff] (!%p1661_p4)   ;;  %v1884_v10 = vld [vmem:[%s2700_s2 + $0x54] ss:$8 sps:$4 sm:$0xff] (!%p1661_p4)  }
  0x16   : > { %v297_v11 = vld [vmem:[%s2699_s1 + $0x8] sm:$0xff] (!%p1661_p4)  ;;  %v1886_v13 = vld [vmem:[%s2700_s2 + $0x50] ss:$8 sps:$4 sm:$0xff] (!%p1661_p4)   ;;  %v1890_v16 = vld [vmem:[%s2700_s2 + $0x74] ss:$8 sps:$4 sm:$0xff] (!%p1661_p4)   ;;  %vm454_vm1 = vcmask (!%p1661_p4), 1043456  }
  0x17   : > { %v299_v12 = vpack.c.bf16 (!%p1661_p4), %v297_v11, %v297_v11  ;;  %v1887_v14 = vld [vmem:[%s2700_s2 + $0x64] ss:$8 sps:$4 sm:$0xff] (!%p1661_p4)   ;;  %v1889_v15 = vld [vmem:[%s2700_s2 + $0x60] ss:$8 sps:$4 sm:$0xff] (!%p1661_p4)   ;;  %v1892_v17 = vld [vmem:[%s2700_s2 + $0x70] ss:$8 sps:$4 sm:$0xff] (!%p1661_p4)  }
  0x18   : > { %464 = vmatpush1.bf16.msra.mxu0 (!%p1661_p4), %v1874_v3  ;;  %v1893_v18 = vld [vmem:[%s2700_s2 + $0x84] ss:$8 sps:$4 sm:$0xff] (!%p1661_p4)   ;;  %v1895_v19 = vld [vmem:[%s2700_s2 + $0x80] ss:$8 sps:$4 sm:$0xff] (!%p1661_p4)   ;;  %v1896_v20 = vld [vmem:[%s2700_s2 + $0x94] ss:$8 sps:$4 sm:$0xff] (!%p1661_p4)  }
  0x19   : > { %465 = vmatprep.subr.bf16.mxu0 %v1875_v4  ;;  %1689 = vmatprep.mubr.msk.bf16.mxu0 %vm450_vm0, %v299_v12  ;;  %v1898_v21 = vld [vmem:[%s2700_s2 + $0x90] ss:$8 sps:$4 sm:$0xff]   ;;  %v1899_v22 = vld [vmem:[%s2700_s2 + $0xa4] ss:$8 sps:$4 sm:$0xff]   ;;  %v1901_v23 = vld [vmem:[%s2700_s2 + $0xa0] ss:$8 sps:$4 sm:$0xff]  }
  0x1a   : > { %v1902_v24 = vld [vmem:[%s2700_s2 + $0xb4] ss:$8 sps:$4 sm:$0xff]   ;;  %v324_v25 = vld [vmem:[%s2700_s2 + $0xc0] sm:$0xff]  ;;  %v1904_v26 = vld [vmem:[%s2700_s2 + $0xb0] ss:$8 sps:$4 sm:$0xff]   ;;  %vm2273_vm2 = vcmp.lt.s32.totalorder %v290_v32, 256 }
  0x1b   : > { %v1687_v27 = vcombine.high %v324_v25, %v324_v25  ;;  %v1686_v28 = vcombine.low %v324_v25, %v324_v25  ;;  %v296_v29 = vld [vmem:[%s2699_s1] sm:$0xff]  ;;  %v2123_v34 = vmov 0.0   ;;  %v2124_v46 = vmov 1966171168  }
  0x1c   : > { %466 = vmatpush1.bf16.msra.mxu0 %v1877_v5  ;;  %v298_v31 = vpack.c.bf16 %v296_v29, %v296_v29  ;;  %294 = vst.msk [vmem:[#allocation3] sm:$0x3] %vm2273_vm2, %v2123_v34  ;;  %295 = vst.msk [vmem:[#allocation4] sm:$0x3] %vm2273_vm2, %v2123_v34  ;;  %v524_v47 = vunpack.c.l.s4 %v2124_v46  ;;  %v527_v57 = vshrl.u32 %v290_v32, 7 }
  0x1d   : > { %467 = vmatprep.subr.bf16.mxu0 %v1878_v6  ;;  %v456_v30 = vsel %vm454_vm1, %v1686_v28, 0 }
  0x1e   : > { %v525_v56 = vunpack.c.0.s8 %v524_v47 }
  0x20   : > { %468 = vmatpush1.bf16.msra.mxu0 %v1880_v7  ;;  %v528_v2 = vsub.s32 %v525_v56, %v527_v57 }
  0x21   : > { %469 = vmatprep.subr.bf16.mxu0 %v1881_v8 }
  0x23   : > { %v544_v12 = vld [vmem:[#allocation4] sm:$0x3] }
  0x24   : > { %470 = vmatpush1.bf16.msra.mxu0 %v1883_v9  ;;  %v507_v9 = vld [vmem:[#allocation3] sm:$0x3] }
  0x25   : > { %471 = vmatprep.subr.bf16.mxu0 %v1884_v10 }
  0x28   : > { %472 = vmatpush1.bf16.msra.mxu0 %v1886_v13 }
  0x29   : > { %473 = vmatprep.subr.bf16.mxu0 %v1887_v14 }
  0x2c   : > { %474 = vmatpush1.bf16.msra.mxu0 %v1889_v15 }
  0x2d   : > { %475 = vmatprep.subr.bf16.mxu0 %v1890_v16 }
  0x30   : > { %476 = vmatpush1.bf16.msra.mxu0 %v1892_v17 }
  0x31   : > { %477 = vmatprep.subr.bf16.mxu0 %v1893_v18 }
  0x34   : > { %478 = vmatpush1.bf16.msra.mxu0 %v1895_v19 }
  0x35   : > { %479 = vmatprep.subr.bf16.mxu0 %v1896_v20 }
  0x38   : > { %480 = vmatpush1.bf16.msra.mxu0 %v1898_v21 }
  0x39   : > { %481 = vmatprep.subr.bf16.mxu0 %v1899_v22 }
  0x3c   : > { %482 = vmatpush1.bf16.msra.mxu0 %v1901_v23 }
  0x3d   : > { %483 = vmatprep.subr.bf16.mxu0 %v1902_v24 }
  0x40   : > { %484 = vmatpush1.bf16.msra.mxu0 %v1904_v26 }
  0x41   : > { %1688 = vmatprep.subr.msk.bf16.mxu0 %vm454_vm1, %v1687_v27 }
  0x44   : > { %486 = vmatpush1.bf16.msra.mxu0 %v456_v30 }
  0x47   : > { %494 = vmatmul.mubr.bf16.vlgmr.msra.gmra.mrb[0].mxu0 %v298_v31 }
 0x11a   : > { %v495_v35 = vpop.f32.mrb[0].mxu0 }
 0x11b   : > { %505 = vst [vmem:[#allocation2] sm:$0xff] %v495_v35  ;;  %v508_v36 = vrot.slane %v495_v35, 4  ;;  %v545_v37 = vmul.f32 %v495_v35, %v495_v35  ;;  %v497_v38 = vpop.f32.mrb[1].mxu0 }
 0x11c   : > { %506 = vst [vmem:[#allocation2 + $0x8] sm:$0xff] %v497_v38  ;;  %v514_v39 = vrot.slane %v497_v38, 4  ;;  %v546_v40 = vmul.f32 %v497_v38, %v497_v38  ;;  %v499_v41 = vpop.f32.mrb[2].mxu0 }
 0x11d   : > { %v509_v42 = vadd.f32 %v508_v36, %v495_v35  ;;  %v547_v43 = vrot.slane %v545_v37, 4  ;;  %v500_v44 = vpop.f32.mrb[3].mxu0 }
 0x11e   : > { %v515_v45 = vadd.f32 %v514_v39, %v497_v38  ;;  %v553_v48 = vrot.slane %v546_v40, 4 }
 0x11f   : > { %v510_v49 = vrot.slane %v509_v42, 2  ;;  %v548_v50 = vadd.f32 %v547_v43, %v545_v37 }
 0x120   : > { %v516_v51 = vrot.slane %v515_v45, 2  ;;  %v554_v52 = vadd.f32 %v553_v48, %v546_v40 }
 0x121   : > { %v511_v53 = vadd.f32 %v510_v49, %v509_v42  ;;  %v549_v54 = vrot.slane %v548_v50, 2 }
 0x122   : > { %v517_v55 = vadd.f32 %v516_v51, %v515_v45  ;;  %v555_v58 = vrot.slane %v554_v52, 2 }
 0x123   : > { %v512_v59 = vrot.slane %v511_v53, 1  ;;  %v550_v60 = vadd.f32 %v549_v54, %v548_v50 }
 0x124   : > { %v518_v61 = vrot.slane %v517_v55, 1  ;;  %v556_v62 = vadd.f32 %v555_v58, %v554_v52 }
 0x125   : > { %v513_v63 = vadd.f32 %v512_v59, %v511_v53  ;;  %v551_v0 = vrot.slane %v550_v60, 1 }
 0x126   : > { %v519_v1 = vadd.f32 %v518_v61, %v517_v55  ;;  %v557_v3 = vrot.slane %v556_v62, 1 }
 0x127   : > { %v552_v4 = vadd.f32 %v551_v0, %v550_v60 }
 0x128   : > { %v522_v5 = vcombine.low %v513_v63, %v519_v1  ;;  %v558_v6 = vadd.f32 %v557_v3, %v556_v62 }
 0x12a   : > { %v529_v7 = vrot.slane %v522_v5, %v528_v2  ;;  %v561_v8 = vcombine.low %v552_v4, %v558_v6 }
 0x12c   : > { %v536_v10 = vrot.slane %v529_v7, %v528_v2  ;;  %v568_v11 = vrot.slane %v561_v8, %v528_v2 }
 0x12e   : > { %v538_v13 = vadd.f32 %v536_v10, %v507_v9  ;;  %v575_v14 = vrot.slane %v568_v11, %v528_v2 }
 0x130   : > { %543 = vst.msk [vmem:[#allocation3] sm:$0x3] %vm2273_vm2, %v538_v13  ;;  %v577_v15 = vadd.f32 %v575_v14, %v544_v12 }
 0x132   : > { %578 = vst.msk [vmem:[#allocation4] sm:$0x3] %vm2273_vm2, %v577_v15 }
 0x133 PF: > { %p1690_p5 = scmp.ne.s32.totalorder %s2113_s26, 1 }
 0x134   : > { %s587_s8 = sld [smem:[#allocation8]] (!%p1690_p5)  ;;  %v1907_v16 = vld [vmem:[%s2703_s5 + $0x4] ss:$28 sps:$4 sm:$0xff] (!%p1690_p5)   ;;  %v1909_v17 = vld [vmem:[%s2703_s5 + $0xc] ss:$28 sps:$4 sm:$0xff] (!%p1690_p5)   ;;  %v689_v37 = vld [vmem:[%s2703_s5 + $0x118] sm:$0xff] (!%p1690_p5) }
 0x135   : > { %582 = sbr.rel (%p1690_p5) target bundleno = 703 (0x2bf), region = 56  ;;  %1390 = vmatprep.subr.bf16.mxu0 (!%p1690_p5), %v1907_v16  ;;  %v1911_v18 = vld [vmem:[%s2703_s5] ss:$28 sps:$4 sm:$0xff] (!%p1690_p5)   ;;  %v1912_v19 = vld [vmem:[%s2703_s5 + $0x8] ss:$28 sps:$4 sm:$0xff] (!%p1690_p5)   ;;  %1431 = vmatprep.subr.bf16.mxu1 (!%p1690_p5), %v1909_v17  ;;  %v693_v38 = vld [vmem:[%s2703_s5 + $0x134] sm:$0xff] (!%p1690_p5) }
 0x136   : > { %v1913_v20 = vld [vmem:[%s2703_s5 + $0x3c] ss:$28 sps:$4 sm:$0xff] (!%p1690_p5)   ;;  %1391 = vmatpush1.bf16.msra.mxu0 (!%p1690_p5), %v1911_v18  ;;  %1432 = vmatpush1.bf16.msra.mxu1 (!%p1690_p5), %v1912_v19  ;;  %v1915_v21 = vld [vmem:[%s2703_s5 + $0x44] ss:$28 sps:$4 sm:$0xff] (!%p1690_p5)   ;;  %v1919_v24 = vld [vmem:[%s2703_s5 + $0x74] ss:$28 sps:$4 sm:$0xff] (!%p1690_p5)   ;;  %v1726_v44 = vcombine.low (!%p1690_p5), %v689_v37, %v693_v38 }
 0x137   : > { %v1917_v22 = vld [vmem:[%s2703_s5 + $0x38] ss:$28 sps:$4 sm:$0xff] (!%p1690_p5)   ;;  %1392 = vmatprep.subr.bf16.mxu0 (!%p1690_p5), %v1913_v20  ;;  %v1918_v23 = vld [vmem:[%s2703_s5 + $0x40] ss:$28 sps:$4 sm:$0xff] (!%p1690_p5)   ;;  %1433 = vmatprep.subr.bf16.mxu1 (!%p1690_p5), %v1915_v21  ;;  %v1923_v26 = vld [vmem:[%s2703_s5 + $0x70] ss:$28 sps:$4 sm:$0xff] (!%p1690_p5)  }
 0x138   : > { %v1921_v25 = vld [vmem:[%s2703_s5 + $0x7c] ss:$28 sps:$4 sm:$0xff] (!%p1690_p5)   ;;  %v1925_v29 = vld [vmem:[%s2703_s5 + $0xac] ss:$28 sps:$4 sm:$0xff] (!%p1690_p5)   ;;  %v1927_v30 = vld [vmem:[%s2703_s5 + $0xb4] ss:$28 sps:$4 sm:$0xff] (!%p1690_p5)  }
 0x139   : > { %v1924_v27 = vld [vmem:[%s2703_s5 + $0x78] ss:$28 sps:$4 sm:$0xff] (!%p1690_p5)   ;;  %v1929_v31 = vld [vmem:[%s2703_s5 + $0xa8] ss:$28 sps:$4 sm:$0xff] (!%p1690_p5)   ;;  %v1930_v32 = vld [vmem:[%s2703_s5 + $0xb0] ss:$28 sps:$4 sm:$0xff] (!%p1690_p5)  }
 0x13a   : > { %s588_s24 = scvt.s32.f32 (!%p1690_p5), %s587_s8  ;;  %1393 = vmatpush1.bf16.msra.mxu0 (!%p1690_p5), %v1917_v22  ;;  %1434 = vmatpush1.bf16.msra.mxu1 (!%p1690_p5), %v1918_v23  ;;  %v1931_v33 = vld [vmem:[%s2703_s5 + $0xe4] ss:$28 sps:$4 sm:$0xff] (!%p1690_p5)   ;;  %v1933_v34 = vld [vmem:[%s2703_s5 + $0xec] ss:$28 sps:$4 sm:$0xff] (!%p1690_p5)   ;;  %v1937_v39 = vld [vmem:[%s2703_s5 + $0x11c] ss:$28 sps:$4 sm:$0xff] (!%p1690_p5)  }
 0x13b   : > { %1394 = vmatprep.subr.bf16.mxu0 (!%p1690_p5), %v1919_v24  ;;  %1435 = vmatprep.subr.bf16.mxu1 (!%p1690_p5), %v1921_v25  ;;  %v1935_v35 = vld [vmem:[%s2703_s5 + $0xe0] ss:$28 sps:$4 sm:$0xff] (!%p1690_p5)   ;;  %v1936_v36 = vld [vmem:[%s2703_s5 + $0xe8] ss:$28 sps:$4 sm:$0xff] (!%p1690_p5)   ;;  %v1941_v46 = vld [vmem:[%s2703_s5 + $0x154] ss:$28 sps:$4 sm:$0xff] (!%p1690_p5)  }
 0x13c   : > { %v589_v28 = vstv %s588_s24  ;;  %v690_v40 = vld [vmem:[%s2703_s5 + $0x120] sm:$0xff]  ;;  %v1943_v47 = vld [vmem:[%s2703_s5 + $0x15c] ss:$28 sps:$4 sm:$0xff]   ;;  %v1945_v48 = vld [vmem:[%s2703_s5 + $0x150] ss:$28 sps:$4 sm:$0xff]   ;;  %vm1566_vm4 = vcmask 130048  }
 0x13d   : > { %2065 = vrcp.f32 %v589_v28  ;;  %v694_v41 = vld [vmem:[%s2703_s5 + $0x13c] sm:$0xff]  ;;  %v1946_v49 = vld [vmem:[%s2703_s5 + $0x158] ss:$28 sps:$4 sm:$0xff]   ;;  %v1947_v50 = vld [vmem:[%s2703_s5 + $0x18c] ss:$28 sps:$4 sm:$0xff]  }
 0x13e   : > { %1395 = vmatpush1.bf16.msra.mxu0 %v1923_v26  ;;  %1436 = vmatpush1.bf16.msra.mxu1 %v1924_v27  ;;  %v1939_v42 = vld [vmem:[%s2703_s5 + $0x124] ss:$28 sps:$4 sm:$0xff]   ;;  %v1728_v45 = vcombine.low %v690_v40, %v694_v41  ;;  %v1949_v51 = vld [vmem:[%s2703_s5 + $0x194] ss:$28 sps:$4 sm:$0xff]   ;;  %v1955_v55 = vld [vmem:[%s2703_s5 + $0x1cc] ss:$28 sps:$4 sm:$0xff]  }
 0x13f   : > { %1396 = vmatprep.subr.bf16.mxu0 %v1925_v29  ;;  %1437 = vmatprep.subr.bf16.mxu1 %v1927_v30  ;;  %v1951_v52 = vld [vmem:[%s2703_s5 + $0x188] ss:$28 sps:$4 sm:$0xff]   ;;  %v1952_v53 = vld [vmem:[%s2703_s5 + $0x190] ss:$28 sps:$4 sm:$0xff]   ;;  %v1957_v56 = vld [vmem:[%s2703_s5 + $0x1c0] ss:$28 sps:$4 sm:$0xff]  }
 0x140   : > { %v1953_v54 = vld [vmem:[%s2703_s5 + $0x1c4] ss:$28 sps:$4 sm:$0xff]   ;;  %v1959_v58 = vld [vmem:[%s2703_s5 + $0x1fc] ss:$28 sps:$4 sm:$0xff]   ;;  %v1965_v62 = vld [vmem:[%s2703_s5 + $0x234] ss:$28 sps:$4 sm:$0xff]  }
 0x141   : > { %v1958_v57 = vld [vmem:[%s2703_s5 + $0x1c8] ss:$28 sps:$4 sm:$0xff]   ;;  %v1963_v60 = vld [vmem:[%s2703_s5 + $0x1f8] ss:$28 sps:$4 sm:$0xff]   ;;  %v1964_v61 = vld [vmem:[%s2703_s5 + $0x200] ss:$28 sps:$4 sm:$0xff]  }
 0x142   : > { %1397 = vmatpush1.bf16.msra.mxu0 %v1929_v31  ;;  %1438 = vmatpush1.bf16.msra.mxu1 %v1930_v32  ;;  %v1961_v59 = vld [vmem:[%s2703_s5 + $0x204] ss:$28 sps:$4 sm:$0xff]   ;;  %v1967_v63 = vld [vmem:[%s2703_s5 + $0x23c] ss:$28 sps:$4 sm:$0xff]   ;;  %v1969_v0 = vld [vmem:[%s2703_s5 + $0x230] ss:$28 sps:$4 sm:$0xff]   ;;  %v603_v32 = vlaneseq }
 0x143   : > { %1398 = vmatprep.subr.bf16.mxu0 %v1931_v33  ;;  %1439 = vmatprep.subr.bf16.mxu1 %v1933_v34  ;;  %v1970_v1 = vld [vmem:[%s2703_s5 + $0x238] ss:$28 sps:$4 sm:$0xff]   ;;  %v1971_v2 = vld [vmem:[%s2703_s5 + $0x26c] ss:$28 sps:$4 sm:$0xff]   ;;  %v1977_v6 = vld [vmem:[%s2703_s5 + $0x2a4] ss:$28 sps:$4 sm:$0xff]  }
 0x144   : > { %v1973_v3 = vld [vmem:[%s2703_s5 + $0x274] ss:$28 sps:$4 sm:$0xff]   ;;  %v1975_v4 = vld [vmem:[%s2703_s5 + $0x268] ss:$28 sps:$4 sm:$0xff]   ;;  %v1981_v8 = vld [vmem:[%s2703_s5 + $0x2a0] ss:$28 sps:$4 sm:$0xff]  }
 0x145   : > { %v1976_v5 = vld [vmem:[%s2703_s5 + $0x270] ss:$28 sps:$4 sm:$0xff]   ;;  %v1982_v9 = vld [vmem:[%s2703_s5 + $0x2a8] ss:$28 sps:$4 sm:$0xff]   ;;  %v1983_v10 = vld [vmem:[%s2703_s5 + $0x2dc] ss:$28 sps:$4 sm:$0xff]  }
 0x146   : > { %1399 = vmatpush1.bf16.msra.mxu0 %v1935_v35  ;;  %1440 = vmatpush1.bf16.msra.mxu1 %v1936_v36  ;;  %v1979_v7 = vld [vmem:[%s2703_s5 + $0x2ac] ss:$28 sps:$4 sm:$0xff]   ;;  %v1985_v11 = vld [vmem:[%s2703_s5 + $0x2e4] ss:$28 sps:$4 sm:$0xff]   ;;  %v1987_v12 = vld [vmem:[%s2703_s5 + $0x2d8] ss:$28 sps:$4 sm:$0xff]  }
 0x147   : > { %v2066_v43 = vpop.eup %2065  ;;  %1400 = vmatprep.subr.bf16.mxu0 %v1937_v39  ;;  %1441 = vmatprep.subr.bf16.mxu1 %v1939_v42  ;;  %v1988_v13 = vld [vmem:[%s2703_s5 + $0x2e0] ss:$28 sps:$4 sm:$0xff]   ;;  %v1989_v14 = vld [vmem:[%s2703_s5 + $0x314] ss:$28 sps:$4 sm:$0xff]   ;;  %v1995_v18 = vld [vmem:[%s2703_s5 + $0x34c] ss:$28 sps:$4 sm:$0xff]  }
 0x148   : > { %1829 = vpush %v2066_v43  ;;  %v1991_v15 = vld [vmem:[%s2703_s5 + $0x31c] ss:$28 sps:$4 sm:$0xff]   ;;  %v1993_v16 = vld [vmem:[%s2703_s5 + $0x310] ss:$28 sps:$4 sm:$0xff]   ;;  %v1999_v20 = vld [vmem:[%s2703_s5 + $0x348] ss:$28 sps:$4 sm:$0xff]  }
 0x149   : > { %v1994_v17 = vld [vmem:[%s2703_s5 + $0x318] ss:$28 sps:$4 sm:$0xff]   ;;  %v2000_v21 = vld [vmem:[%s2703_s5 + $0x350] ss:$28 sps:$4 sm:$0xff]   ;;  %v599_v33 = vld [vmem:[%s2701_s3] sm:$0x3] }
 0x14a   : > { %1401 = vmatpush1.bf16.msra.mxu0 %v1726_v44  ;;  %1442 = vmatpush1.bf16.msra.mxu1 %v1728_v45  ;;  %v1997_v19 = vld [vmem:[%s2703_s5 + $0x354] ss:$28 sps:$4 sm:$0xff]   ;;  %vm605_vm3 = vcmp.lt.s32.totalorder %v603_v32, 256  ;;  %v608_v36 = vld [vmem:[%s2702_s4] sm:$0x3]  ;;  %v2496_v38 = vshrl.u32 %v603_v32, 7 }
 0x14b   : > { %1402 = vmatprep.subr.bf16.mxu0 %v1941_v46  ;;  %1443 = vmatprep.subr.bf16.mxu1 %v1943_v47  ;;  %v2003_v22 = vld [vmem:[%s2703_s5 + $0x14] ss:$28 sps:$4 sm:$0xff]   ;;  %v616_v45 = vld [vmem:[#allocation2 + $0x8] sm:$0xff]  ;;  %v615_v46 = vld [vmem:[#allocation2] sm:$0xff] }
 0x14c   : > { %v2004_v23 = vld [vmem:[%s2703_s5 + $0x1d8] ss:$28 sps:$4 sm:$0xff]   ;;  %v592_v24 = vld [vmem:[#allocation3] sm:$0x3]  ;;  %v595_v26 = vld [vmem:[#allocation4] sm:$0x3] }
 0x14d   : > { %v2499_v40 = vsub.s32 1, %v2496_v38  ;;  %v2502_v41 = vsub.s32 0, %v2496_v38  ;;  %v2055_v32 = vld [vmem:[%s2703_s5 + $0x2b4] ss:$28 sps:$4 sm:$0xff]  }
 0x14e   : > { %1403 = vmatpush1.bf16.msra.mxu0 %v1945_v48  ;;  %1444 = vmatpush1.bf16.msra.mxu1 %v1946_v49 }
 0x14f   : > { %1404 = vmatprep.subr.bf16.mxu0 %v1947_v50  ;;  %1445 = vmatprep.subr.bf16.mxu1 %v1949_v51 }
 0x152   : > { %1405 = vmatpush1.bf16.msra.mxu0 %v1951_v52  ;;  %1446 = vmatpush1.bf16.msra.mxu1 %v1952_v53 }
 0x153   : > { %1406 = vmatprep.subr.bf16.mxu0 %v1953_v54  ;;  %1447 = vmatprep.subr.bf16.mxu1 %v1955_v55 }
 0x156   : > { %1407 = vmatpush1.bf16.msra.mxu0 %v1957_v56  ;;  %1448 = vmatpush1.bf16.msra.mxu1 %v1958_v57  ;;  %v2001_v57 = vld [vmem:[%s2703_s5 + $0x10] ss:$28 sps:$4 sm:$0xff]  }
 0x157   : > { %1408 = vmatprep.subr.bf16.mxu0 %v1959_v58  ;;  %1449 = vmatprep.subr.bf16.mxu1 %v1961_v59  ;;  %v2005_v59 = vld [vmem:[%s2703_s5 + $0x18] ss:$28 sps:$4 sm:$0xff]  }
 0x15a   : > { %1409 = vmatpush1.bf16.msra.mxu0 %v1963_v60  ;;  %1450 = vmatpush1.bf16.msra.mxu1 %v1964_v61  ;;  %v2008_v60 = vld [vmem:[%s2703_s5 + $0x4c] ss:$28 sps:$4 sm:$0xff]  }
 0x15b   : > { %1410 = vmatprep.subr.bf16.mxu0 %v1965_v62  ;;  %1451 = vmatprep.subr.bf16.mxu1 %v1967_v63  ;;  %v2009_v61 = vld [vmem:[%s2703_s5 + $0x210] ss:$28 sps:$4 sm:$0xff]   ;;  %v2006_v62 = vld [vmem:[%s2703_s5 + $0x48] ss:$28 sps:$4 sm:$0xff]  }
 0x15c   : > { %v2010_v63 = vld [vmem:[%s2703_s5 + $0x50] ss:$28 sps:$4 sm:$0xff]  }
 0x15e   : > { %1411 = vmatpush1.bf16.msra.mxu0 %v1969_v0  ;;  %1452 = vmatpush1.bf16.msra.mxu1 %v1970_v1  ;;  %v2013_v0 = vld [vmem:[%s2703_s5 + $0x84] ss:$28 sps:$4 sm:$0xff]  }
 0x15f   : > { %1412 = vmatprep.subr.bf16.mxu0 %v1971_v2  ;;  %1453 = vmatprep.subr.bf16.mxu1 %v1973_v3  ;;  %v2014_v1 = vld [vmem:[%s2703_s5 + $0x248] ss:$28 sps:$4 sm:$0xff]   ;;  %v2011_v2 = vld [vmem:[%s2703_s5 + $0x80] ss:$28 sps:$4 sm:$0xff]  }
 0x160   : > { %v2015_v3 = vld [vmem:[%s2703_s5 + $0x88] ss:$28 sps:$4 sm:$0xff]  }
 0x162   : > { %1413 = vmatpush1.bf16.msra.mxu0 %v1975_v4  ;;  %1454 = vmatpush1.bf16.msra.mxu1 %v1976_v5  ;;  %v2018_v4 = vld [vmem:[%s2703_s5 + $0xbc] ss:$28 sps:$4 sm:$0xff]  }
 0x163   : > { %1414 = vmatprep.subr.bf16.mxu0 %v1977_v6  ;;  %1455 = vmatprep.subr.bf16.mxu1 %v1979_v7  ;;  %v2019_v5 = vld [vmem:[%s2703_s5 + $0x280] ss:$28 sps:$4 sm:$0xff]   ;;  %v2016_v6 = vld [vmem:[%s2703_s5 + $0xb8] ss:$28 sps:$4 sm:$0xff]  }
 0x164   : > { %v2020_v7 = vld [vmem:[%s2703_s5 + $0xc0] ss:$28 sps:$4 sm:$0xff]  }
 0x166   : > { %1415 = vmatpush1.bf16.msra.mxu0 %v1981_v8  ;;  %1456 = vmatpush1.bf16.msra.mxu1 %v1982_v9  ;;  %v2023_v8 = vld [vmem:[%s2703_s5 + $0xf4] ss:$28 sps:$4 sm:$0xff]  }
 0x167   : > { %1416 = vmatprep.subr.bf16.mxu0 %v1983_v10  ;;  %1457 = vmatprep.subr.bf16.mxu1 %v1985_v11  ;;  %v2024_v9 = vld [vmem:[%s2703_s5 + $0x2b8] ss:$28 sps:$4 sm:$0xff]   ;;  %v2021_v10 = vld [vmem:[%s2703_s5 + $0xf0] ss:$28 sps:$4 sm:$0xff]  }
 0x168   : > { %v2025_v11 = vld [vmem:[%s2703_s5 + $0xf8] ss:$28 sps:$4 sm:$0xff]  }
 0x16a   : > { %1417 = vmatpush1.bf16.msra.mxu0 %v1987_v12  ;;  %1458 = vmatpush1.bf16.msra.mxu1 %v1988_v13  ;;  %v2028_v12 = vld [vmem:[%s2703_s5 + $0x12c] ss:$28 sps:$4 sm:$0xff]  }
 0x16b   : > { %1418 = vmatprep.subr.bf16.mxu0 %v1989_v14  ;;  %1459 = vmatprep.subr.bf16.mxu1 %v1991_v15  ;;  %v2029_v13 = vld [vmem:[%s2703_s5 + $0x2f0] ss:$28 sps:$4 sm:$0xff]   ;;  %v2026_v14 = vld [vmem:[%s2703_s5 + $0x128] ss:$28 sps:$4 sm:$0xff]  }
 0x16c   : > { %v2030_v15 = vld [vmem:[%s2703_s5 + $0x130] ss:$28 sps:$4 sm:$0xff]  }
 0x16e   : > { %1419 = vmatpush1.bf16.msra.mxu0 %v1993_v16  ;;  %1460 = vmatpush1.bf16.msra.mxu1 %v1994_v17  ;;  %v2033_v16 = vld [vmem:[%s2703_s5 + $0x164] ss:$28 sps:$4 sm:$0xff]  }
 0x16f   : > { %1420 = vmatprep.subr.bf16.mxu0 %v1995_v18  ;;  %1461 = vmatprep.subr.bf16.mxu1 %v1997_v19  ;;  %v2034_v17 = vld [vmem:[%s2703_s5 + $0x328] ss:$28 sps:$4 sm:$0xff]   ;;  %v2031_v18 = vld [vmem:[%s2703_s5 + $0x160] ss:$28 sps:$4 sm:$0xff]  }
 0x170   : > { %v2035_v19 = vld [vmem:[%s2703_s5 + $0x168] ss:$28 sps:$4 sm:$0xff]  }
 0x172   : > { %1421 = vmatpush1.bf16.msra.mxu0 %v1999_v20  ;;  %1462 = vmatpush1.bf16.msra.mxu1 %v2000_v21  ;;  %v2038_v20 = vld [vmem:[%s2703_s5 + $0x19c] ss:$28 sps:$4 sm:$0xff]  }
 0x173   : > { %1472 = vmatprep.subr.bf16.mxu0 %v2003_v22  ;;  %1807 = vmatprep.subr.bf16.mxu1 %v2004_v23  ;;  %v2039_v21 = vld [vmem:[%s2703_s5 + $0x360] ss:$28 sps:$4 sm:$0xff]   ;;  %v2036_v22 = vld [vmem:[%s2703_s5 + $0x198] ss:$28 sps:$4 sm:$0xff]  }
 0x174   : > { %v2040_v23 = vld [vmem:[%s2703_s5 + $0x1a0] ss:$28 sps:$4 sm:$0xff]  }
 0x179   : > { %s1830_s14 = spop %1829 }
 0x17a   : > { %v593_v25 = vstv %s1830_s14 }
 0x17b   : > { %v594_v27 = vmul.f32 %v593_v25, %v592_v24  ;;  %v596_v28 = vmul.f32 %v595_v26, %v593_v25  ;;  %v2043_v24 = vld [vmem:[%s2703_s5 + $0x1d4] ss:$28 sps:$4 sm:$0xff]   ;;  %v2046_v26 = vld [vmem:[%s2703_s5 + $0x20c] ss:$28 sps:$4 sm:$0xff]  }
 0x17c   : > { %v2041_v25 = vld [vmem:[%s2703_s5 + $0x1d0] ss:$28 sps:$4 sm:$0xff]  }
 0x17d   : > { %v597_v29 = vmul.f32 %v594_v27, %v594_v27 }
 0x17f   : > { %v598_v30 = vsub.f32 %v596_v28, %v597_v29  ;;  %v2049_v28 = vld [vmem:[%s2703_s5 + $0x244] ss:$28 sps:$4 sm:$0xff]  }
 0x180   : > { %v2047_v29 = vld [vmem:[%s2703_s5 + $0x240] ss:$28 sps:$4 sm:$0xff]  }
 0x181   : > { %v600_v31 = vadd.f32 1e-05, %v598_v30  ;;  %v2052_v30 = vld [vmem:[%s2703_s5 + $0x27c] ss:$28 sps:$4 sm:$0xff]  }
 0x183   : > { %2067 = vrsqrt.f32 %v600_v31  ;;  %v2050_v31 = vld [vmem:[%s2703_s5 + $0x278] ss:$28 sps:$4 sm:$0xff]  }
 0x18d   : > { %v2068_v34 = vpop.eup %2067 }
 0x18e   : > { %v602_v35 = vmul.f32 %v2068_v34, %v599_v33  ;;  %v2053_v33 = vld [vmem:[%s2703_s5 + $0x2b0] ss:$28 sps:$4 sm:$0xff]  }
 0x18f   : > { %v2058_v34 = vld [vmem:[%s2703_s5 + $0x2ec] ss:$28 sps:$4 sm:$0xff]  }
 0x190   : > { %607 = vst.msk [vmem:[#allocation5] sm:$0x3] %vm605_vm3, %v602_v35  ;;  %v609_v37 = vmul.f32 %v602_v35, %v594_v27  ;;  %v2044_v27 = vld [vmem:[%s2703_s5 + $0x208] ss:$28 sps:$4 sm:$0xff]  }
 0x191   : > { %v2056_v35 = vld [vmem:[%s2703_s5 + $0x2e8] ss:$28 sps:$4 sm:$0xff]  }
 0x192   : > { %v610_v39 = vsub.f32 %v608_v36, %v609_v37  ;;  %v2061_v36 = vld [vmem:[%s2703_s5 + $0x324] ss:$28 sps:$4 sm:$0xff]  }
 0x193   : > { %v2059_v37 = vld [vmem:[%s2703_s5 + $0x320] ss:$28 sps:$4 sm:$0xff]  }
 0x194   : > { %611 = vst.msk [vmem:[#allocation6] sm:$0x3] %vm605_vm3, %v610_v39  ;;  %v2064_v39 = vld [vmem:[%s2703_s5 + $0x35c] ss:$28 sps:$4 sm:$0xff]  }
 0x197   : > { %v617_v42 = vld [vmem:[#allocation5] sm:$0x3] }
 0x198   : > { %v626_v43 = vrot.slane %v617_v42, %v2499_v40  ;;  %v622_v44 = vrot.slane %v617_v42, %v2502_v41  ;;  %v2062_v42 = vld [vmem:[%s2703_s5 + $0x358] ss:$28 sps:$4 sm:$0xff]  }
 0x19a   : > { %v630_v48 = vmul.f32 %v626_v43, %v616_v45  ;;  %v629_v50 = vmul.f32 %v622_v44, %v615_v46  ;;  %v789_v43 = vsub.s32 2, %v2496_v38  ;;  %v777_v44 = vld [vmem:[%s2704_s6] sm:$0x7f]  ;;  %v793_v45 = vsub.s32 3, %v2496_v38 }
 0x19b   : > { %v631_v47 = vld [vmem:[#allocation6] sm:$0x3]  ;;  %v782_v46 = vrot.slane %v777_v44, %v2502_v41 }
 0x19c   : > { %v640_v49 = vrot.slane %v631_v47, %v2499_v40  ;;  %v636_v51 = vrot.slane %v631_v47, %v2502_v41  ;;  %v790_v47 = vrot.slane %v777_v44, %v789_v43 }
 0x19e   : > { %v644_v52 = vadd.f32 %v640_v49, %v630_v48  ;;  %v643_v53 = vadd.f32 %v636_v51, %v629_v50  ;;  %v786_v48 = vrot.slane %v777_v44, %v2499_v40  ;;  %v794_v49 = vrot.slane %v777_v44, %v793_v45 }
 0x19f   : > { %v805_v40 = vsub.s32 6, %v2496_v38 }
 0x1a0   : > { %v646_v54 = vmax.f32 %v644_v52, 0.0  ;;  %v645_v55 = vmax.f32 %v643_v53, 0.0 }
 0x1a2   : > { %v648_v56 = vpack.c.bf16 %v646_v54, %v646_v54  ;;  %v2511_v58 = vpack.c.bf16 %v645_v55, %v645_v55 }
 0x1a4   : > { %1422 = vmatprep.mubr.bf16.mxu0 %v648_v56  ;;  %1463 = vmatprep.mubr.bf16.mxu1 %v648_v56 }
 0x1a5   : > { %1423 = vmatmul.mubr.bf16.vlgmr.msra.gmra.mrb[0].mxu0 %v2511_v58  ;;  %1464 = vmatmul.mubr.bf16.vlgmr.msra.gmra.mrb[0].mxu1 %v2511_v58 }
 0x1a6   : > { %1473 = vmatpush1.bf16.msra.mxu0 %v2001_v57  ;;  %1808 = vmatpush3.bf16.msra.mxu1 %v2005_v59 }
 0x1a7   : > { %1504 = vmatprep.mubr.bf16.mxu0 %v648_v56  ;;  %1545 = vmatprep.mubr.bf16.mxu1 %v648_v56 }
 0x1a8   : > { %1474 = vmatprep.subr.bf16.mxu0 %v2008_v60  ;;  %1809 = vmatprep.subr.bf16.mxu1 %v2009_v61 }
 0x1aa   : > { %1475 = vmatpush1.bf16.msra.mxu0 %v2006_v62  ;;  %1810 = vmatpush3.bf16.msra.mxu1 %v2010_v63 }
 0x1ab   : > { %1476 = vmatprep.subr.bf16.mxu0 %v2013_v0  ;;  %1811 = vmatprep.subr.bf16.mxu1 %v2014_v1 }
 0x1ae   : > { %1477 = vmatpush1.bf16.msra.mxu0 %v2011_v2  ;;  %1812 = vmatpush3.bf16.msra.mxu1 %v2015_v3  ;;  %v806_v2 = vrot.slane %v777_v44, %v805_v40 }
 0x1af   : > { %1478 = vmatprep.subr.bf16.mxu0 %v2018_v4  ;;  %1813 = vmatprep.subr.bf16.mxu1 %v2019_v5 }
 0x1b2   : > { %1479 = vmatpush1.bf16.msra.mxu0 %v2016_v6  ;;  %1814 = vmatpush3.bf16.msra.mxu1 %v2020_v7 }
 0x1b3   : > { %1480 = vmatprep.subr.bf16.mxu0 %v2023_v8  ;;  %1815 = vmatprep.subr.bf16.mxu1 %v2024_v9  ;;  %v797_v9 = vsub.s32 4, %v2496_v38 }
 0x1b6   : > { %1481 = vmatpush1.bf16.msra.mxu0 %v2021_v10  ;;  %1816 = vmatpush3.bf16.msra.mxu1 %v2025_v11  ;;  %v801_v10 = vsub.s32 5, %v2496_v38  ;;  %v798_v11 = vrot.slane %v777_v44, %v797_v9 }
 0x1b7   : > { %1482 = vmatprep.subr.bf16.mxu0 %v2028_v12  ;;  %1817 = vmatprep.subr.bf16.mxu1 %v2029_v13 }
 0x1b8   : > { %v802_v12 = vrot.slane %v777_v44, %v801_v10 }
 0x1ba   : > { %1483 = vmatpush1.bf16.msra.mxu0 %v2026_v14  ;;  %1818 = vmatpush3.bf16.msra.mxu1 %v2030_v15 }
 0x1bb   : > { %1484 = vmatprep.subr.bf16.mxu0 %v2033_v16  ;;  %1819 = vmatprep.subr.bf16.mxu1 %v2034_v17 }
 0x1be   : > { %1485 = vmatpush1.bf16.msra.mxu0 %v2031_v18  ;;  %1820 = vmatpush3.bf16.msra.mxu1 %v2035_v19 }
 0x1bf   : > { %1486 = vmatprep.subr.bf16.mxu0 %v2038_v20  ;;  %1821 = vmatprep.subr.bf16.mxu1 %v2039_v21 }
 0x1c2   : > { %1487 = vmatpush1.bf16.msra.mxu0 %v2036_v22  ;;  %1822 = vmatpush3.bf16.msra.mxu1 %v2040_v23 }
 0x1c3   : > { %1488 = vmatprep.subr.bf16.mxu0 %v2043_v24 }
 0x1c5   : > { %1546 = vmatmul.mubr.bf16.vlgmr.msra.gmra.mrb[4].mxu1 %v2511_v58 }
 0x1c6   : > { %1489 = vmatpush1.bf16.msra.mxu0 %v2041_v25 }
 0x1c7   : > { %1490 = vmatprep.subr.bf16.mxu0 %v2046_v26 }
 0x1ca   : > { %1491 = vmatpush1.bf16.msra.mxu0 %v2044_v27 }
 0x1cb   : > { %1492 = vmatprep.subr.bf16.mxu0 %v2049_v28 }
 0x1ce   : > { %1493 = vmatpush1.bf16.msra.mxu0 %v2047_v29 }
 0x1cf   : > { %1494 = vmatprep.subr.bf16.mxu0 %v2052_v30 }
 0x1d2   : > { %1495 = vmatpush1.bf16.msra.mxu0 %v2050_v31 }
 0x1d3   : > { %1496 = vmatprep.subr.bf16.mxu0 %v2055_v32 }
 0x1d6   : > { %1497 = vmatpush1.bf16.msra.mxu0 %v2053_v33 }
 0x1d7   : > { %1498 = vmatprep.subr.bf16.mxu0 %v2058_v34 }
 0x1da   : > { %1499 = vmatpush1.bf16.msra.mxu0 %v2056_v35 }
 0x1db   : > { %1500 = vmatprep.subr.bf16.mxu0 %v2061_v36 }
 0x1de   : > { %1501 = vmatpush1.bf16.msra.mxu0 %v2059_v37 }
 0x1df   : > { %1502 = vmatprep.subr.bf16.mxu0 %v2064_v39 }
 0x1e2   : > { %1503 = vmatpush1.bf16.msra.mxu0 %v2062_v42 }
 0x1e5   : > { %1505 = vmatmul.mubr.bf16.vlgmr.msra.gmra.mrb[4].mxu0 %v2511_v58 }
 0x278   : > { %v1424_v50 = vpop.f32.mrb[0].mxu0  ;;  %v1465_v51 = vpop.f32.mrb[0].mxu1 }
 0x279   : > { %v1425_v52 = vadd.f32 %v1424_v50, %v782_v46  ;;  %v1466_v53 = vadd.f32 %v1465_v51, %v790_v47  ;;  %v1426_v54 = vpop.f32.mrb[1].mxu0  ;;  %v1467_v55 = vpop.f32.mrb[1].mxu1 }
 0x27a   : > { %v1427_v56 = vadd.f32 %v1426_v54, %v786_v48  ;;  %v1468_v57 = vadd.f32 %v1467_v55, %v794_v49  ;;  %v1428_v58 = vpop.f32.mrb[2].mxu0  ;;  %v1469_v59 = vpop.f32.mrb[2].mxu1 }
 0x27b   : > { %v1553_v60 = vmax.f32 %v1425_v52, 0.0  ;;  %v1555_v61 = vmax.f32 %v1466_v53, 0.0  ;;  %v1429_v62 = vpop.f32.mrb[3].mxu0  ;;  %v1470_v63 = vpop.f32.mrb[3].mxu1 }
 0x27c   : > { %v1554_v0 = vmax.f32 %v1427_v56, 0.0  ;;  %v1556_v41 = vmax.f32 %v1468_v57, 0.0 }
 0x27d   : > { %1560 = vst [vmem:[#allocation9] sm:$0xff] %v1553_v60  ;;  %1562 = vst [vmem:[#allocation9 + $0x10] sm:$0xff] %v1555_v61 }
 0x27e   : > { %1561 = vst [vmem:[#allocation9 + $0x8] sm:$0xff] %v1554_v0  ;;  %1563 = vst [vmem:[#allocation9 + $0x18] sm:$0xff] %v1556_v41 }
 0x298   : > { %v1823_v1 = vpop.f32.mrb[4].mxu1 }
 0x299   : > { %v1824_v3 = vpop.f32.mrb[5].mxu1 }
 0x29a   : > { %v1825_v4 = vadd.f32 %v1824_v3, %v1823_v1  ;;  %v1826_v5 = vpop.f32.mrb[6].mxu1 }
 0x29b   : > { %v1827_v6 = vpop.f32.mrb[7].mxu1 }
 0x29c   : > { %v1548_v7 = vadd.f32 %v1825_v4, %v806_v2 }
 0x29e   : > { %v1559_v8 = vmax.f32 %v1548_v7, 0.0 }
 0x2a0   : > { %1567 = vst.msk [vmem:[#allocation9 + $0x30] sm:$0xff] %vm1566_vm4, %v1559_v8 }
 0x2b8   : > { %v1506_v13 = vpop.f32.mrb[4].mxu0 }
 0x2b9   : > { %v1507_v14 = vadd.f32 %v1506_v13, %v798_v11  ;;  %v1508_v15 = vpop.f32.mrb[5].mxu0 }
 0x2ba   : > { %v1509_v16 = vadd.f32 %v1508_v15, %v802_v12  ;;  %v1510_v17 = vpop.f32.mrb[6].mxu0 }
 0x2bb   : > { %v1557_v18 = vmax.f32 %v1507_v14, 0.0  ;;  %v1511_v19 = vpop.f32.mrb[7].mxu0 }
 0x2bc   : > { %v1558_v20 = vmax.f32 %v1509_v16, 0.0 }
 0x2bd   : > { %1564 = vst [vmem:[#allocation9 + $0x20] sm:$0xff] %v1557_v18 }
 0x2be   : > { %1565 = vst [vmem:[#allocation9 + $0x28] sm:$0xff] %v1558_v20 }
 0x2bf PF: > { %p2664_p6 = scmp.eq.s32.totalorder %s1655_s0, 1  ;;  %s2125_s17 = smov [#allocation9]  }
 0x2c0   : > { %s1584_s18 = sshll.u32 %s2125_s17, 4  ;;  %s1585_s18 = int_to_ptr.vmem [resolvable:$true] %s1584_s18 }
 0x2c1   : > { %s2069_s19 = scalar_lea.vmem %s1585_s18, 896  ;;  %s2075_s20 = scalar_lea.vmem %s1585_s18, 1792 }
 0x2c2   : > { %p2070_p7 = scmp.ne.s32.totalorder %s1585_s18, %s2069_s19  ;;  %p2076_p10 = scmp.lt.s32.totalorder %s1585_s18, %s1585_s18 }
 0x2c3   : > { %p2077_p11 = scmp.lt.s32.totalorder %s2075_s20, %s2069_s19 }
 0x2c4   : > { %p2071_p8 = pnand %p2070_p7, %p2664_p6 }
 0x2c5   : > { %p2078_p12 = por %p2077_p11, %p2076_p10 }
 0x2c6   : > { %p2072_p9 = pneg %p2071_p8 }
 0x2c8   : > { %p2079_p13 = pnand %p2078_p12, %p2072_p9 }
 0x2ca   : > { %2082 = shalt.err (!%p2079_p13)
}
 0x2cb   : > { %s2083_s22 = scalar_lea.hbm %s2705_s7, 896 }
 0x2cc   : > { %p2084_p0 = scmp.ne.s32.totalorder %s2705_s7, %s2083_s22  ;;  %p2089_p3 = scmp.lt.u32.totalorder %s2083_s22, %s2705_s7 }
 0x2ce   : > { %p2085_p1 = pnand %p2084_p0, %p2664_p6 }
 0x2d0   : > { %p2086_p2 = pneg %p2085_p1 }
 0x2d2   : > { %p2091_p4 = pnand %p2089_p3, %p2086_p2 }
 0x2d4   : > { %2094 = shalt.err (!%p2091_p4)
}
 0x2d5   : > { %1832 = dma.vmem_to_hbm [thread:$0]  (%p2664_p6), %s1585_s18, 896, %s2705_s7, [#allocation10]  }
 0x2d6 PF: > { %p1840_p5 = scmp.ge.s32.totalorder %s2121_s28, 2  ;;  %p1841_p7 = scmp.eq.s32.totalorder %s1656_s29, 1 }
 0x2d8   : > { %p1836_p8 = pnand %p1841_p7, %p1840_p5 }
 0x2da   : > { %2108 = dma.done.wait (!%p1836_p8), [#allocation10], 896  }
 0x2db   : > { %2110 = vsyncadd (!%p1836_p8), [#allocation10], 4294966400  ;;  %s21_s28 = sadd.s32 1, %s2121_s28   ;;  %s2709_s26 = smov %s2117_s27 }
 0x2dc   : > { %p18_p9 = scmp.ge.s32.totalorder %s21_s28, 4   ;;  %s2710_s27 = smov %s2712_s30 }
 0x2de   :  { %20 = sbr.rel (!%p18_p9) target bundleno = 5 (0x5), region = 97 }
 0x2e5   :  { %1602 = vsyncpa [#allocation10], 1 }
 0x2e6   :  { %1604 = vsyncpa [#allocation10 + $0x1], 1 }

</bundles_post_ra>
